<compile_context>
chip_gen: v7x
topology: tpu7x:2x2x1
jax: 0.10.0
libtpu: 0.0.40
codegen_flags: <defaults>
</compile_context>

<pallas_src>
import jax
import jax.numpy as jnp
from jax.experimental import pallas as pl
from jax.experimental.pallas import tpu as pltpu

STATE_DIM = 128
HIDDEN_DIM = 128
ACTION_DIM = 4

MAX_TILE_B = 4096  # rows per grid step (multiple of 16)


def _round_up(n, m):
    return ((n + m - 1) // m) * m


def qnet_kernel(x_ref, w1_ref, b1_ref, w2_ref, b2_ref, o_ref):
    # x arrives as f32 (streamed from HBM); cast to bf16 on the VPU just before
    # the MXU dot. Accumulation, bias-add and ReLU stay in f32.
    x = x_ref[...].astype(jnp.bfloat16)
    h = jnp.dot(x, w1_ref[...], preferred_element_type=jnp.float32)
    h = jnp.maximum(h + b1_ref[...], 0.0)            # b1 is (1, HIDDEN), broadcasts
    out = jnp.dot(h.astype(w2_ref.dtype), w2_ref[...],
                  preferred_element_type=jnp.float32)
    o_ref[...] = (out + b2_ref[...]).astype(o_ref.dtype)


def qnet_forward(x, w1, b1, w2, b2, *, tile_b=MAX_TILE_B):
    """Qnet forward. x: (B, STATE_DIM) f32. Returns (B, ACTION_DIM) f32.

    Precision contract: x / W1 / W2 are rounded to bf16 for the MXU; all
    accumulation, bias-adds and the ReLU are f32.
    """
    B = x.shape[0]
    x = x.astype(jnp.float32)

    # Weights are tiny (<=64 KiB) and VMEM-resident across the whole grid, so a
    # one-time bf16 cast is essentially free and halves their single HBM read.
    w1b = w1.astype(jnp.bfloat16)
    w2b = w2.astype(jnp.bfloat16)
    b1f = jnp.reshape(b1, (1, HIDDEN_DIM)).astype(jnp.float32)
    b2f = jnp.reshape(b2, (1, ACTION_DIM)).astype(jnp.float32)

    # Batch tile: multiple of 16, as large as possible (amortizes per-step
    # overhead), but capped at ~ceil(B/4) so large B keeps >=4 grid steps for
    # megacore sharding on v7x. Never larger than needed for tiny B.
    desired = _round_up(pl.cdiv(B, 4), 16)
    tb = max(16, (min(tile_b, desired) // 16) * 16)
    tb = min(tb, _round_up(B, 8))          # tiny-B case: shrink to the f32-safe minimum
    grid = (pl.cdiv(B, tb),)               # partial last block: OOB stores are masked

    flops = 2 * B * (STATE_DIM * HIDDEN_DIM + HIDDEN_DIM * ACTION_DIM)
    bytes_accessed = (
        B * STATE_DIM * 4                  # x (f32, streamed)
        + STATE_DIM * HIDDEN_DIM * 2       # W1 (bf16, read once)
        + HIDDEN_DIM * 4                   # b1 (f32)
        + HIDDEN_DIM * ACTION_DIM * 2      # W2 (bf16)
        + ACTION_DIM * 4                   # b2 (f32)
        + B * ACTION_DIM * 4               # out (f32)
    )

    return pl.pallas_call(
        qnet_kernel,
        out_shape=jax.ShapeDtypeStruct((B, ACTION_DIM), jnp.float32),
        grid_spec=pltpu.PrefetchScalarGridSpec(
            num_scalar_prefetch=0,
            grid=grid,
            in_specs=[
                # x tile walks the batch axis; weights/biases stay at block (0,0)
                # so they are DMA'd once and remain VMEM-resident.
                pl.BlockSpec((tb, STATE_DIM), lambda i: (i, 0)),
                pl.BlockSpec((STATE_DIM, HIDDEN_DIM), lambda i: (0, 0)),
                pl.BlockSpec((1, HIDDEN_DIM), lambda i: (0, 0)),
                pl.BlockSpec((HIDDEN_DIM, ACTION_DIM), lambda i: (0, 0)),
                pl.BlockSpec((1, ACTION_DIM), lambda i: (0, 0)),
            ],
            out_specs=pl.BlockSpec((tb, ACTION_DIM), lambda i: (i, 0)),
        ),
        compiler_params=pltpu.CompilerParams(
            dimension_semantics=("parallel",)),
        cost_estimate=pl.CostEstimate(
            flops=flops, transcendentals=0, bytes_accessed=bytes_accessed),
    )(x, w1b, b1f, w2b, b2f)


def init_params(key):
    # Deterministic init mimicking torch.nn.Linear's U(-1/sqrt(fan_in), +1/sqrt(fan_in)).
    k1, k2, k3, k4 = jax.random.split(key, 4)
    bound1 = 1.0 / jnp.sqrt(jnp.float32(STATE_DIM))
    bound2 = 1.0 / jnp.sqrt(jnp.float32(HIDDEN_DIM))
    w1 = jax.random.uniform(k1, (STATE_DIM, HIDDEN_DIM), jnp.float32, -bound1, bound1)
    b1 = jax.random.uniform(k2, (1, HIDDEN_DIM), jnp.float32, -bound1, bound1)
    w2 = jax.random.uniform(k3, (HIDDEN_DIM, ACTION_DIM), jnp.float32, -bound2, bound2)
    b2 = jax.random.uniform(k4, (1, ACTION_DIM), jnp.float32, -bound2, bound2)
    return w1, b1, w2, b2


if __name__ == "__main__":
    key = jax.random.PRNGKey(0)
    kx, kx2, kp = jax.random.split(key, 3)
    w1, b1, w2, b2 = init_params(kp)

    def ref_fwd(x):
        # Reference with the same bf16 operand precision as the kernel.
        xf = x.astype(jnp.bfloat16).astype(jnp.float32)
        w1f = w1.astype(jnp.bfloat16).astype(jnp.float32)
        w2f = w2.astype(jnp.bfloat16).astype(jnp.float32)
        h = jnp.maximum(xf @ w1f + b1, 0.0)
        return h @ w2f + b2

    ok = True

    # Small batch (B=8, single exact block).
    x = jax.random.normal(kx, (8, STATE_DIM), jnp.float32)
    out = jax.block_until_ready(qnet_forward(x, w1, b1, w2, b2))
    ok &= out.shape == (8, ACTION_DIM)
    ok &= bool(jnp.allclose(out, ref_fwd(x), atol=2e-2, rtol=2e-2))

    # Batch not a multiple of the tile (exercises the masked partial last block).
    x2 = jax.random.normal(kx2, (37, STATE_DIM), jnp.float32)
    out2 = jax.block_until_ready(qnet_forward(x2, w1, b1, w2, b2))
    ok &= out2.shape == (37, ACTION_DIM)
    ok &= bool(jnp.allclose(out2, ref_fwd(x2), atol=2e-2, rtol=2e-2))

    assert ok
    print("KERNEL_OK")
</pallas_src>

<mosaic_0001>
module attributes {stable_mosaic.version = 11 : i64} {
  func.func @qnet_kernel(%arg0: i32, %arg1: memref<8x128xf32, #tpu.memory_space<vmem>>, %arg2: memref<128x128xbf16, #tpu.memory_space<vmem>>, %arg3: memref<1x128xf32, #tpu.memory_space<vmem>>, %arg4: memref<128x4xbf16, #tpu.memory_space<vmem>>, %arg5: memref<1x4xf32, #tpu.memory_space<vmem>>, %arg6: memref<8x4xf32, #tpu.memory_space<vmem>>) attributes {dimension_semantics = [#tpu.dimension_semantics<parallel>], iteration_bounds = array<i64: 1>, scalar_prefetch = 0 : i64, scratch_operands = 0 : i64, tpu.core_type = #tpu.core_type<tc>, window_params = [{transform_indices = @transform_0, window_bounds = array<i64: 8, 128>}, {pipeline_mode = #tpu.pipeline_mode<synchronous>, transform_indices = @transform_1, window_bounds = array<i64: 128, 128>}, {pipeline_mode = #tpu.pipeline_mode<synchronous>, transform_indices = @transform_2, window_bounds = array<i64: 1, 128>}, {pipeline_mode = #tpu.pipeline_mode<synchronous>, transform_indices = @transform_3, window_bounds = array<i64: 128, 4>}, {pipeline_mode = #tpu.pipeline_mode<synchronous>, transform_indices = @transform_4, window_bounds = array<i64: 1, 4>}, {transform_indices = @transform_5, window_bounds = array<i64: 8, 4>}]} {
    %c0 = arith.constant 0 : index
    %c0_0 = arith.constant 0 : index
    %0 = vector.load %arg1[%c0, %c0_0] : memref<8x128xf32, #tpu.memory_space<vmem>>, vector<8x128xf32>
    %1 = arith.truncf %0 : vector<8x128xf32> to vector<8x128xbf16>
    %c0_1 = arith.constant 0 : index
    %c0_2 = arith.constant 0 : index
    %2 = vector.load %arg2[%c0_1, %c0_2] : memref<128x128xbf16, #tpu.memory_space<vmem>>, vector<128x128xbf16>
    %cst = arith.constant dense<0.000000e+00> : vector<8x128xf32>
    %3 = tpu.matmul %1, %2, %cst {dimension_numbers = #tpu.dot_dimension_numbers<[1], [0], [0], [1], [0, 0, 1, 1], [], []>} : vector<8x128xbf16>, vector<128x128xbf16>, vector<8x128xf32> -> vector<8x128xf32>
    %c0_3 = arith.constant 0 : index
    %c0_4 = arith.constant 0 : index
    %4 = vector.load %arg3[%c0_3, %c0_4] : memref<1x128xf32, #tpu.memory_space<vmem>>, vector<1x128xf32>
    %5 = vector.broadcast %4 : vector<1x128xf32> to vector<8x128xf32>
    %6 = arith.addf %3, %5 : vector<8x128xf32>
    %cst_5 = arith.constant 0.000000e+00 : f32
    %7 = vector.broadcast %cst_5 : f32 to vector<8x128xf32>
    %8 = arith.maximumf %6, %7 : vector<8x128xf32>
    %9 = arith.truncf %8 : vector<8x128xf32> to vector<8x128xbf16>
    %c0_6 = arith.constant 0 : index
    %c0_7 = arith.constant 0 : index
    %10 = vector.load %arg4[%c0_6, %c0_7] : memref<128x4xbf16, #tpu.memory_space<vmem>>, vector<128x4xbf16>
    %cst_8 = arith.constant dense<0.000000e+00> : vector<8x4xf32>
    %11 = tpu.matmul %9, %10, %cst_8 {dimension_numbers = #tpu.dot_dimension_numbers<[1], [0], [0], [1], [0, 0, 1, 1], [], []>} : vector<8x128xbf16>, vector<128x4xbf16>, vector<8x4xf32> -> vector<8x4xf32>
    %c0_9 = arith.constant 0 : index
    %c0_10 = arith.constant 0 : index
    %12 = vector.load %arg5[%c0_9, %c0_10] : memref<1x4xf32, #tpu.memory_space<vmem>>, vector<1x4xf32>
    %13 = vector.broadcast %12 : vector<1x4xf32> to vector<8x4xf32>
    %14 = arith.addf %11, %13 : vector<8x4xf32>
    %c0_11 = arith.constant 0 : index
    %c0_12 = arith.constant 0 : index
    %15 = vector.load %arg6[%c0_11, %c0_12] : memref<8x4xf32, #tpu.memory_space<vmem>>, vector<8x4xf32>
    tpu.vector_store %arg6[%c0_11, %c0_12], %14 {strides = array<i32>} : memref<8x4xf32, #tpu.memory_space<vmem>>, vector<8x4xf32>,
    return
  }
  func.func @transform_0(%arg0: i32) -> (i32, i32) {
    %c0_i32 = arith.constant 0 : i32
    %c0_i32_0 = arith.constant 0 : i32
    return %arg0, %c0_i32 : i32, i32
  }
  func.func @transform_1(%arg0: i32) -> (i32, i32) {
    %c0_i32 = arith.constant 0 : i32
    %c0_i32_0 = arith.constant 0 : i32
    %c0_i32_1 = arith.constant 0 : i32
    return %c0_i32, %c0_i32_0 : i32, i32
  }
  func.func @transform_2(%arg0: i32) -> (i32, i32) {
    %c0_i32 = arith.constant 0 : i32
    %c0_i32_0 = arith.constant 0 : i32
    %c0_i32_1 = arith.constant 0 : i32
    return %c0_i32, %c0_i32_0 : i32, i32
  }
  func.func @transform_3(%arg0: i32) -> (i32, i32) {
    %c0_i32 = arith.constant 0 : i32
    %c0_i32_0 = arith.constant 0 : i32
    %c0_i32_1 = arith.constant 0 : i32
    return %c0_i32, %c0_i32_0 : i32, i32
  }
  func.func @transform_4(%arg0: i32) -> (i32, i32) {
    %c0_i32 = arith.constant 0 : i32
    %c0_i32_0 = arith.constant 0 : i32
    %c0_i32_1 = arith.constant 0 : i32
    return %c0_i32, %c0_i32_0 : i32, i32
  }
  func.func @transform_5(%arg0: i32) -> (i32, i32) {
    %c0_i32 = arith.constant 0 : i32
    %c0_i32_0 = arith.constant 0 : i32
    return %arg0, %c0_i32 : i32, i32
  }
}

</mosaic_0001>

<bundles_post_ra>
// kernel: tpu_custom_call.1
= control target key start
LH: loop header
LB: loop body
LE: loop exit
PB: predicated region body
PF: predicated region fallthrough
CT: control target
= control target key end

     0   :  { %10 = vsyncpa [#allocation3], 0  ;;  %s385_s18 = smov [#allocation2]   ;;  %s487_s0 = inlined_call_operand.hbm [shape: f32[8,128], index: 0, kind: input, shape index: {}]   ;;  %s488_s1 = inlined_call_operand.vmem [shape: bf16[128,128], index: 1, kind: input, shape index: {}]   ;;  %s489_s2 = inlined_call_operand.vmem [shape: f32[1,128], index: 2, kind: input, shape index: {}]   ;;  %s490_s3 = inlined_call_operand.vmem [shape: bf16[128,4], index: 3, kind: input, shape index: {}]   ;;  %s491_s4 = inlined_call_operand.vmem [shape: f32[1,4], index: 4, kind: input, shape index: {}]   ;;  %s492_s5 = inlined_call_operand.vmem [shape: f32[8,4], index: 5, kind: output, shape index: {}]  }
   0x1   :  { %s17_s19 = sshll.u32 %s385_s18, 4  ;;  %s361_s22 = scalar_lea.hbm %s487_s0, 128  ;;  %s18_s19 = int_to_ptr.vmem [resolvable:$true] %s17_s19 }
   0x2   :  { %p362_p0 = scmp.ne.s32.totalorder %s487_s0, %s361_s22  ;;  %p365_p1 = scmp.lt.u32.totalorder %s361_s22, %s487_s0 }
   0x4   :  { %p367_p2 = pnand %p365_p1, %p362_p0 }
   0x6   :  { %370 = shalt.err (!%p367_p2)
}
   0x7   :  { %s371_s27 = scalar_lea.vmem %s18_s19, 128  ;;  %p376_p4 = scmp.lt.s32.totalorder %s18_s19, %s18_s19 }
   0x8   :  { %p372_p3 = scmp.ne.s32.totalorder %s18_s19, %s371_s27  ;;  %p377_p5 = scmp.lt.s32.totalorder %s371_s27, %s371_s27 }
   0xa   :  { %p378_p6 = por %p377_p5, %p376_p4 }
   0xc   :  { %p379_p7 = pnand %p378_p6, %p372_p3 }
   0xe   :  { %382 = shalt.err (!%p379_p7)
}
   0xf   :  { %20 = dma.hbm_to_vmem [thread:$0]  %s487_s0, 128, %s18_s19, [#allocation3]  }
  0x10   :  { %383 = dma.done.wait [#allocation3], 128  }
  0x11   :  { %384 = vsyncadd [#allocation3], 4294967168  ;;  %v386_v0 = vmov 0.0   ;;  %vm387_vm0 = vmmov 0   ;;  %v345_v1 = vld [vmem:[%s488_s1] sm:$0xff]   ;;  %v346_v2 = vld [vmem:[%s488_s1 + $0x8] sm:$0xff]  }
  0x12   :  { %302 = vmatprep.subr.bf16.mxu0 %v386_v0  ;;  %318 = vmatprep.mubr.msk.bf16.mxu0 %vm387_vm0, %v386_v0  ;;  %v347_v3 = vld [vmem:[%s488_s1 + $0x10] sm:$0xff]   ;;  %v353_v4 = vld [vmem:[%s490_s3] sm:$0xff]   ;;  %v348_v5 = vld [vmem:[%s488_s1 + $0x18] sm:$0xff]   ;;  %vm259_vm1 = vcmask 31744  }
  0x13   :  { %322 = vmatprep.subr.bf16.mxu1 %v386_v0  ;;  %338 = vmatprep.mubr.msk.bf16.mxu1 %vm387_vm0, %v386_v0  ;;  %v354_v6 = vld [vmem:[%s490_s3 + $0x8] sm:$0xff]   ;;  %v349_v7 = vld [vmem:[%s488_s1 + $0x20] sm:$0xff]   ;;  %v355_v8 = vld [vmem:[%s490_s3 + $0x10] sm:$0xff]  }
  0x14   :  { %303 = vmatpush3.bf16.msra.mxu0 %v345_v1  ;;  %323 = vmatpush3.bf16.msra.mxu1 %v353_v4  ;;  %v350_v9 = vld [vmem:[%s488_s1 + $0x28] sm:$0xff]   ;;  %v356_v10 = vld [vmem:[%s490_s3 + $0x18] sm:$0xff]   ;;  %v351_v11 = vld [vmem:[%s488_s1 + $0x30] sm:$0xff]  }
  0x15   :  { %304 = vmatprep.subr.bf16.mxu0 %v386_v0  ;;  %324 = vmatprep.subr.bf16.mxu1 %v386_v0  ;;  %v357_v12 = vld [vmem:[%s490_s3 + $0x20] sm:$0xff]   ;;  %v352_v13 = vld [vmem:[%s488_s1 + $0x38] sm:$0xff]   ;;  %v358_v15 = vld [vmem:[%s490_s3 + $0x28] sm:$0xff]  }
  0x16   :  { %v33_v14 = vld [vmem:[#allocation2] sm:$0xff]  ;;  %v359_v17 = vld [vmem:[%s490_s3 + $0x30] sm:$0xff]   ;;  %v360_v18 = vld [vmem:[%s490_s3 + $0x38] sm:$0xff]  }
  0x17   :  { %v34_v16 = vpack.c.bf16 %v33_v14, %v33_v14  ;;  %v266_v19 = vld [vmem:[%s489_s2] ss:$0 sm:$0xff] }
  0x18   :  { %305 = vmatpush3.bf16.msra.mxu0 %v346_v2  ;;  %325 = vmatpush3.bf16.msra.mxu1 %v354_v6  ;;  %v275_v27 = vld [vmem:[%s491_s4] ss:$0 sm:$0xff] }
  0x19   :  { %306 = vmatprep.subr.bf16.mxu0 %v386_v0  ;;  %326 = vmatprep.subr.bf16.mxu1 %v386_v0 }
  0x1c   :  { %307 = vmatpush3.bf16.msra.mxu0 %v347_v3  ;;  %327 = vmatpush3.bf16.msra.mxu1 %v355_v8 }
  0x1d   :  { %308 = vmatprep.subr.bf16.mxu0 %v386_v0  ;;  %328 = vmatprep.subr.bf16.mxu1 %v386_v0 }
  0x20   :  { %309 = vmatpush3.bf16.msra.mxu0 %v348_v5  ;;  %329 = vmatpush3.bf16.msra.mxu1 %v356_v10 }
  0x21   :  { %310 = vmatprep.subr.bf16.mxu0 %v386_v0  ;;  %330 = vmatprep.subr.bf16.mxu1 %v386_v0 }
  0x24   :  { %311 = vmatpush3.bf16.msra.mxu0 %v349_v7  ;;  %331 = vmatpush3.bf16.msra.mxu1 %v357_v12 }
  0x25   :  { %312 = vmatprep.subr.bf16.mxu0 %v386_v0  ;;  %332 = vmatprep.subr.bf16.mxu1 %v386_v0 }
  0x28   :  { %313 = vmatpush3.bf16.msra.mxu0 %v350_v9  ;;  %333 = vmatpush3.bf16.msra.mxu1 %v358_v15 }
  0x29   :  { %314 = vmatprep.subr.bf16.mxu0 %v386_v0  ;;  %334 = vmatprep.subr.bf16.mxu1 %v386_v0 }
  0x2c   :  { %315 = vmatpush3.bf16.msra.mxu0 %v351_v11  ;;  %335 = vmatpush3.bf16.msra.mxu1 %v359_v17 }
  0x2d   :  { %316 = vmatprep.subr.bf16.mxu0 %v386_v0  ;;  %336 = vmatprep.subr.bf16.mxu1 %v386_v0 }
  0x30   :  { %317 = vmatpush3.bf16.msra.mxu0 %v352_v13  ;;  %337 = vmatpush3.bf16.msra.mxu1 %v360_v18 }
  0x33   :  { %319 = vmatmul.mubr.bf16.vlgmr.msra.gmra.mrb[0].mxu0 %v34_v16 }
 0x106   :  { %v140_v20 = vpop.f32.mrb[0].mxu0 }
 0x107   :  { %v141_v21 = vadd.f32 %v266_v19, %v140_v20  ;;  %v320_v22 = vpop.f32.mrb[1].mxu0 }
 0x108   :  { %v143_v23 = vpop.f32.mrb[2].mxu0 }
 0x109   :  { %v146_v24 = vmax.f32 %v141_v21, 0.0  ;;  %v321_v25 = vpop.f32.mrb[3].mxu0 }
 0x10b   :  { %v147_v26 = vpack.c.bf16 %v146_v24, %v146_v24 }
 0x10d   :  { %339 = vmatmul.mubr.bf16.vlgmr.msra.gmra.mrb[0].mxu1 %v147_v26 }
 0x1e0   :  { %v253_v28 = vpop.f32.mrb[0].mxu1 }
 0x1e1   :  { %v254_v29 = vadd.f32 %v275_v27, %v253_v28  ;;  %v340_v30 = vpop.f32.mrb[1].mxu1 }
 0x1e2   :  { %v256_v31 = vpop.f32.mrb[2].mxu1 }
 0x1e3   :  { %260 = vst.msk [vmem:[%s492_s5] sm:$0xff] %vm259_vm1, %v254_v29  ;;  %v341_v32 = vpop.f32.mrb[3].mxu1 }
 0x1e4   :  { %265 = vsyncpa [#allocation3], 1 }

</bundles_post_ra>
